<compile_context>
chip_gen: v7x
topology: tpu7x:2x2x1
jax: 0.10.0
libtpu: 0.0.40
codegen_flags: <defaults>
</compile_context>

<pallas_src>
import jax
import jax.numpy as jnp
from jax import lax
from jax.experimental import pallas as pl
from jax.experimental.pallas import tpu as pltpu

INV_TEMP = 1.0 / 0.07  # forward() divides logits by the hard-coded 0.07


def _round_up(x, m):
    return (x + m - 1) // m * m


def _vmem_limit_bytes():
    """Generation-aware scoped-VMEM limit (v5e/v6e: 128 MiB phys, v7x: 64 MiB)."""
    try:
        phys = pltpu.get_tpu_info().vmem_capacity_bytes
    except Exception:
        phys = 64 * 1024 * 1024  # conservative (v7x-sized) fallback
    return int(min(phys * 3 // 4, 64 * 1024 * 1024))


def _pick_tn(n_pad, C, K, in_dtype, neg_dtype, vmem_limit, cap_rows=2048):
    """Largest row tile (multiple of 8, divides n_pad) fitting the VMEM budget."""
    budget = int(vmem_limit * 0.8)  # headroom for output blocks / misc scratch
    c_pad = _round_up(C, 128)        # lane padding of (tn, C) VMEM blocks
    kc_pad = _round_up(K * C, 128)   # lane padding of (tn, K*C) VMEM block
    in_item = jnp.dtype(in_dtype).itemsize
    neg_item = jnp.dtype(neg_dtype).itemsize
    # Double-buffered DMA blocks, in the *input* dtype, lane-padded.
    dma_per_row = 2 * (2 * c_pad * in_item) + 2 * (kc_pad * neg_item)
    # In-kernel f32 working set: ei/ej copies + ~2 live per-k slices + (tn,1) temps.
    work_per_row = (4 * c_pad + 4 * 128) * 4
    row_bytes = dma_per_row + work_per_row
    cap = max(8, min(cap_rows, (budget // max(row_bytes, 1)) // 8 * 8))
    cap = min(cap, n_pad)
    if n_pad >= 16:  # keep >= 2 tiles so the parallel grid can split across cores
        cap = min(cap, max(8, (n_pad // 2) // 8 * 8))
    best = 8
    d = 8
    while d <= cap:
        if n_pad % d == 0:
            best = d
        d += 8
    return best


def contrastive_loss_ppc(emb_i, emb_j, emb_neg, *, tn=None):
    """emb_i/emb_j: [N, C], emb_neg: [N, K, C]. Returns the scalar InfoNCE loss."""
    N, C = emb_i.shape
    _, K, _ = emb_neg.shape

    # Lane-dense view of the dominant tensor (free row-major reshape).
    emb_neg2d = emb_neg.reshape(N, K * C)

    # Pad rows to a multiple of 8 (sublane tile); padded rows masked in-kernel.
    n_pad = _round_up(N, 8)
    if n_pad != N:
        pad = n_pad - N
        emb_i = jnp.pad(emb_i, ((0, pad), (0, 0)), constant_values=1.0)
        emb_j = jnp.pad(emb_j, ((0, pad), (0, 0)), constant_values=1.0)
        emb_neg2d = jnp.pad(emb_neg2d, ((0, pad), (0, 0)), constant_values=1.0)

    vmem_limit = _vmem_limit_bytes()
    if tn is None:
        tn = _pick_tn(n_pad, C, K, emb_i.dtype, emb_neg.dtype, vmem_limit)
    assert n_pad % tn == 0 and tn % 8 == 0, (n_pad, tn)
    num_tiles = n_pad // tn

    def kernel(emb_i_ref, emb_j_ref, emb_neg_ref, out_ref):
        ei = emb_i_ref[...].astype(jnp.float32)  # (tn, C)
        ej = emb_j_ref[...].astype(jnp.float32)  # (tn, C)

        inv_ni = lax.rsqrt(jnp.sum(ei * ei, axis=-1, keepdims=True))  # (tn, 1)
        inv_nj = lax.rsqrt(jnp.sum(ej * ej, axis=-1, keepdims=True))  # (tn, 1)

        # Positive logit (normalize-after-dot).
        lp = (jnp.sum(ei * ej, axis=-1, keepdims=True)
              * inv_ni * inv_nj) * INV_TEMP                           # (tn, 1)

        # Negative logits from per-k (tn, C) slices — no (tn, K, C) f32 temporary.
        neg_logits = []
        for k in range(K):
            enk = emb_neg_ref[:, k * C:(k + 1) * C].astype(jnp.float32)  # (tn, C)
            dk = jnp.sum(ei * enk, axis=-1, keepdims=True)
            inv_nk = lax.rsqrt(jnp.sum(enk * enk, axis=-1, keepdims=True))
            neg_logits.append(dk * inv_ni * inv_nk * INV_TEMP)           # (tn, 1)

        # Cross-entropy with label 0:  loss = logsumexp(logits) - l_pos.
        m = lp
        for lk in neg_logits:
            m = jnp.maximum(m, lk)
        s = jnp.exp(lp - m)
        for lk in neg_logits:
            s = s + jnp.exp(lk - m)
        per_sample = m + jnp.log(s) - lp                               # (tn, 1)

        if n_pad != N:  # exclude padded rows from the partial sum
            row = (pl.program_id(0) * tn
                   + lax.broadcasted_iota(jnp.int32, (tn, 1), 0))
            per_sample = jnp.where(row < N, per_sample, 0.0)

        # Lane-dense, unmasked (8, 128) store of this tile's partial sum.
        out_ref[...] = jnp.sum(per_sample) + jnp.zeros_like(out_ref)

    partials = pl.pallas_call(
        kernel,
        out_shape=jax.ShapeDtypeStruct((num_tiles, 8, 128), jnp.float32),
        grid_spec=pltpu.PrefetchScalarGridSpec(
            num_scalar_prefetch=0,
            grid=(num_tiles,),
            in_specs=[
                pl.BlockSpec((tn, C), lambda i: (i, 0)),
                pl.BlockSpec((tn, C), lambda i: (i, 0)),
                pl.BlockSpec((tn, K * C), lambda i: (i, 0)),
            ],
            out_specs=pl.BlockSpec((1, 8, 128), lambda i: (i, 0, 0)),
        ),
        compiler_params=pltpu.CompilerParams(
            dimension_semantics=("parallel",),   # independent row tiles
            vmem_limit_bytes=vmem_limit,
        ),
    )(emb_i, emb_j, emb_neg2d)

    # Final mean in plain JAX; each tile's exact partial sum is at [i, 0, 0].
    return jnp.sum(partials[:, 0, 0]) / N


def _reference_loss(emb_i, emb_j, emb_neg):
    """Pure-JAX reference mirroring the PyTorch forward."""
    emb_i = emb_i / jnp.linalg.norm(emb_i, axis=-1, keepdims=True)
    emb_j = emb_j / jnp.linalg.norm(emb_j, axis=-1, keepdims=True)
    emb_neg = emb_neg / jnp.linalg.norm(emb_neg, axis=-1, keepdims=True)
    l_pos = jnp.einsum('nc,nc->n', emb_i, emb_j)[:, None]
    l_neg = jnp.einsum('nc,nkc->nk', emb_i, emb_neg)
    logits = jnp.concatenate([l_pos, l_neg], axis=1) / 0.07
    lse = jax.scipy.special.logsumexp(logits, axis=-1)
    return jnp.mean(lse - logits[:, 0])


if __name__ == "__main__":
    key = jax.random.PRNGKey(0)
    k1, k2, k3, k4, k5, k6 = jax.random.split(key, 6)

    # Primary small example (divisible-by-8 batch).
    N, C, K = 8, 32, 8
    emb_i = jax.random.normal(k1, (N, C), dtype=jnp.float32)
    emb_j = jax.random.normal(k2, (N, C), dtype=jnp.float32)
    emb_neg = jax.random.normal(k3, (N, K, C), dtype=jnp.float32)

    loss = jax.block_until_ready(contrastive_loss_ppc(emb_i, emb_j, emb_neg))
    ref = _reference_loss(emb_i, emb_j, emb_neg)
    assert jnp.allclose(loss, ref, rtol=1e-4, atol=1e-4), (loss, ref)

    # Ragged batch (exercises the row-padding + in-kernel mask path).
    N2 = 12
    emb_i2 = jax.random.normal(k4, (N2, C), dtype=jnp.float32)
    emb_j2 = jax.random.normal(k5, (N2, C), dtype=jnp.float32)
    emb_neg2 = jax.random.normal(k6, (N2, K, C), dtype=jnp.float32)

    loss2 = jax.block_until_ready(contrastive_loss_ppc(emb_i2, emb_j2, emb_neg2))
    ref2 = _reference_loss(emb_i2, emb_j2, emb_neg2)
    assert jnp.allclose(loss2, ref2, rtol=1e-4, atol=1e-4), (loss2, ref2)

    print("KERNEL_OK")
</pallas_src>

<mosaic_0001>
module attributes {stable_mosaic.version = 11 : i64} {
  func.func @kernel(%arg0: i32, %arg1: memref<8x32xf32, #tpu.memory_space<vmem>>, %arg2: memref<8x32xf32, #tpu.memory_space<vmem>>, %arg3: memref<8x256xf32, #tpu.memory_space<vmem>>, %arg4: memref<1x8x128xf32, #tpu.memory_space<vmem>>) attributes {dimension_semantics = [#tpu.dimension_semantics<parallel>], iteration_bounds = array<i64: 1>, scalar_prefetch = 0 : i64, scratch_operands = 0 : i64, tpu.core_type = #tpu.core_type<tc>, window_params = [{transform_indices = @transform_0, window_bounds = array<i64: 8, 32>}, {transform_indices = @transform_1, window_bounds = array<i64: 8, 32>}, {transform_indices = @transform_2, window_bounds = array<i64: 8, 256>}, {transform_indices = @transform_3, window_bounds = array<i64: 1, 8, 128>}]} {
    %c0 = arith.constant 0 : index
    %c0_0 = arith.constant 0 : index
    %0 = vector.load %arg1[%c0, %c0_0] : memref<8x32xf32, #tpu.memory_space<vmem>>, vector<8x32xf32>
    %c0_1 = arith.constant 0 : index
    %c0_2 = arith.constant 0 : index
    %1 = vector.load %arg2[%c0_1, %c0_2] : memref<8x32xf32, #tpu.memory_space<vmem>>, vector<8x32xf32>
    %2 = arith.mulf %0, %0 : vector<8x32xf32>
    %cst = arith.constant dense<0.000000e+00> : vector<8xf32>
    %3 = vector.multi_reduction <add>, %2, %cst [1] : vector<8x32xf32> to vector<8xf32>
    %4 = vector.shape_cast %3 : vector<8xf32> to vector<8x1xf32>
    %5 = math.rsqrt %4 : vector<8x1xf32>
    %6 = arith.mulf %1, %1 : vector<8x32xf32>
    %cst_3 = arith.constant dense<0.000000e+00> : vector<8xf32>
    %7 = vector.multi_reduction <add>, %6, %cst_3 [1] : vector<8x32xf32> to vector<8xf32>
    %8 = vector.shape_cast %7 : vector<8xf32> to vector<8x1xf32>
    %9 = math.rsqrt %8 : vector<8x1xf32>
    %10 = arith.mulf %0, %1 : vector<8x32xf32>
    %cst_4 = arith.constant dense<0.000000e+00> : vector<8xf32>
    %11 = vector.multi_reduction <add>, %10, %cst_4 [1] : vector<8x32xf32> to vector<8xf32>
    %12 = vector.shape_cast %11 : vector<8xf32> to vector<8x1xf32>
    %13 = arith.mulf %12, %5 : vector<8x1xf32>
    %14 = arith.mulf %13, %9 : vector<8x1xf32>
    %cst_5 = arith.constant 14.2857141 : f32
    %15 = vector.broadcast %cst_5 : f32 to vector<8x1xf32>
    %16 = arith.mulf %14, %15 : vector<8x1xf32>
    %c0_6 = arith.constant 0 : index
    %c0_7 = arith.constant 0 : index
    %17 = vector.load %arg3[%c0_6, %c0_7] : memref<8x256xf32, #tpu.memory_space<vmem>>, vector<8x32xf32>
    %18 = arith.mulf %0, %17 : vector<8x32xf32>
    %cst_8 = arith.constant dense<0.000000e+00> : vector<8xf32>
    %19 = vector.multi_reduction <add>, %18, %cst_8 [1] : vector<8x32xf32> to vector<8xf32>
    %20 = vector.shape_cast %19 : vector<8xf32> to vector<8x1xf32>
    %21 = arith.mulf %17, %17 : vector<8x32xf32>
    %cst_9 = arith.constant dense<0.000000e+00> : vector<8xf32>
    %22 = vector.multi_reduction <add>, %21, %cst_9 [1] : vector<8x32xf32> to vector<8xf32>
    %23 = vector.shape_cast %22 : vector<8xf32> to vector<8x1xf32>
    %24 = math.rsqrt %23 : vector<8x1xf32>
    %25 = arith.mulf %20, %5 : vector<8x1xf32>
    %26 = arith.mulf %25, %24 : vector<8x1xf32>
    %cst_10 = arith.constant 14.2857141 : f32
    %27 = vector.broadcast %cst_10 : f32 to vector<8x1xf32>
    %28 = arith.mulf %26, %27 : vector<8x1xf32>
    %c0_11 = arith.constant 0 : index
    %c32 = arith.constant 32 : index
    %29 = vector.load %arg3[%c0_11, %c32] : memref<8x256xf32, #tpu.memory_space<vmem>>, vector<8x32xf32>
    %30 = arith.mulf %0, %29 : vector<8x32xf32>
    %cst_12 = arith.constant dense<0.000000e+00> : vector<8xf32>
    %31 = vector.multi_reduction <add>, %30, %cst_12 [1] : vector<8x32xf32> to vector<8xf32>
    %32 = vector.shape_cast %31 : vector<8xf32> to vector<8x1xf32>
    %33 = arith.mulf %29, %29 : vector<8x32xf32>
    %cst_13 = arith.constant dense<0.000000e+00> : vector<8xf32>
    %34 = vector.multi_reduction <add>, %33, %cst_13 [1] : vector<8x32xf32> to vector<8xf32>
    %35 = vector.shape_cast %34 : vector<8xf32> to vector<8x1xf32>
    %36 = math.rsqrt %35 : vector<8x1xf32>
    %37 = arith.mulf %32, %5 : vector<8x1xf32>
    %38 = arith.mulf %37, %36 : vector<8x1xf32>
    %cst_14 = arith.constant 14.2857141 : f32
    %39 = vector.broadcast %cst_14 : f32 to vector<8x1xf32>
    %40 = arith.mulf %38, %39 : vector<8x1xf32>
    %c0_15 = arith.constant 0 : index
    %c64 = arith.constant 64 : index
    %41 = vector.load %arg3[%c0_15, %c64] : memref<8x256xf32, #tpu.memory_space<vmem>>, vector<8x32xf32>
    %42 = arith.mulf %0, %41 : vector<8x32xf32>
    %cst_16 = arith.constant dense<0.000000e+00> : vector<8xf32>
    %43 = vector.multi_reduction <add>, %42, %cst_16 [1] : vector<8x32xf32> to vector<8xf32>
    %44 = vector.shape_cast %43 : vector<8xf32> to vector<8x1xf32>
    %45 = arith.mulf %41, %41 : vector<8x32xf32>
    %cst_17 = arith.constant dense<0.000000e+00> : vector<8xf32>
    %46 = vector.multi_reduction <add>, %45, %cst_17 [1] : vector<8x32xf32> to vector<8xf32>
    %47 = vector.shape_cast %46 : vector<8xf32> to vector<8x1xf32>
    %48 = math.rsqrt %47 : vector<8x1xf32>
    %49 = arith.mulf %44, %5 : vector<8x1xf32>
    %50 = arith.mulf %49, %48 : vector<8x1xf32>
    %cst_18 = arith.constant 14.2857141 : f32
    %51 = vector.broadcast %cst_18 : f32 to vector<8x1xf32>
    %52 = arith.mulf %50, %51 : vector<8x1xf32>
    %c0_19 = arith.constant 0 : index
    %c96 = arith.constant 96 : index
    %53 = vector.load %arg3[%c0_19, %c96] : memref<8x256xf32, #tpu.memory_space<vmem>>, vector<8x32xf32>
    %54 = arith.mulf %0, %53 : vector<8x32xf32>
    %cst_20 = arith.constant dense<0.000000e+00> : vector<8xf32>
    %55 = vector.multi_reduction <add>, %54, %cst_20 [1] : vector<8x32xf32> to vector<8xf32>
    %56 = vector.shape_cast %55 : vector<8xf32> to vector<8x1xf32>
    %57 = arith.mulf %53, %53 : vector<8x32xf32>
    %cst_21 = arith.constant dense<0.000000e+00> : vector<8xf32>
    %58 = vector.multi_reduction <add>, %57, %cst_21 [1] : vector<8x32xf32> to vector<8xf32>
    %59 = vector.shape_cast %58 : vector<8xf32> to vector<8x1xf32>
    %60 = math.rsqrt %59 : vector<8x1xf32>
    %61 = arith.mulf %56, %5 : vector<8x1xf32>
    %62 = arith.mulf %61, %60 : vector<8x1xf32>
    %cst_22 = arith.constant 14.2857141 : f32
    %63 = vector.broadcast %cst_22 : f32 to vector<8x1xf32>
    %64 = arith.mulf %62, %63 : vector<8x1xf32>
    %c0_23 = arith.constant 0 : index
    %c128 = arith.constant 128 : index
    %65 = vector.load %arg3[%c0_23, %c128] : memref<8x256xf32, #tpu.memory_space<vmem>>, vector<8x32xf32>
    %66 = arith.mulf %0, %65 : vector<8x32xf32>
    %cst_24 = arith.constant dense<0.000000e+00> : vector<8xf32>
    %67 = vector.multi_reduction <add>, %66, %cst_24 [1] : vector<8x32xf32> to vector<8xf32>
    %68 = vector.shape_cast %67 : vector<8xf32> to vector<8x1xf32>
    %69 = arith.mulf %65, %65 : vector<8x32xf32>
    %cst_25 = arith.constant dense<0.000000e+00> : vector<8xf32>
    %70 = vector.multi_reduction <add>, %69, %cst_25 [1] : vector<8x32xf32> to vector<8xf32>
    %71 = vector.shape_cast %70 : vector<8xf32> to vector<8x1xf32>
    %72 = math.rsqrt %71 : vector<8x1xf32>
    %73 = arith.mulf %68, %5 : vector<8x1xf32>
    %74 = arith.mulf %73, %72 : vector<8x1xf32>
    %cst_26 = arith.constant 14.2857141 : f32
    %75 = vector.broadcast %cst_26 : f32 to vector<8x1xf32>
    %76 = arith.mulf %74, %75 : vector<8x1xf32>
    %c0_27 = arith.constant 0 : index
    %c160 = arith.constant 160 : index
    %77 = vector.load %arg3[%c0_27, %c160] : memref<8x256xf32, #tpu.memory_space<vmem>>, vector<8x32xf32>
    %78 = arith.mulf %0, %77 : vector<8x32xf32>
    %cst_28 = arith.constant dense<0.000000e+00> : vector<8xf32>
    %79 = vector.multi_reduction <add>, %78, %cst_28 [1] : vector<8x32xf32> to vector<8xf32>
    %80 = vector.shape_cast %79 : vector<8xf32> to vector<8x1xf32>
    %81 = arith.mulf %77, %77 : vector<8x32xf32>
    %cst_29 = arith.constant dense<0.000000e+00> : vector<8xf32>
    %82 = vector.multi_reduction <add>, %81, %cst_29 [1] : vector<8x32xf32> to vector<8xf32>
    %83 = vector.shape_cast %82 : vector<8xf32> to vector<8x1xf32>
    %84 = math.rsqrt %83 : vector<8x1xf32>
    %85 = arith.mulf %80, %5 : vector<8x1xf32>
    %86 = arith.mulf %85, %84 : vector<8x1xf32>
    %cst_30 = arith.constant 14.2857141 : f32
    %87 = vector.broadcast %cst_30 : f32 to vector<8x1xf32>
    %88 = arith.mulf %86, %87 : vector<8x1xf32>
    %c0_31 = arith.constant 0 : index
    %c192 = arith.constant 192 : index
    %89 = vector.load %arg3[%c0_31, %c192] : memref<8x256xf32, #tpu.memory_space<vmem>>, vector<8x32xf32>
    %90 = arith.mulf %0, %89 : vector<8x32xf32>
    %cst_32 = arith.constant dense<0.000000e+00> : vector<8xf32>
    %91 = vector.multi_reduction <add>, %90, %cst_32 [1] : vector<8x32xf32> to vector<8xf32>
    %92 = vector.shape_cast %91 : vector<8xf32> to vector<8x1xf32>
    %93 = arith.mulf %89, %89 : vector<8x32xf32>
    %cst_33 = arith.constant dense<0.000000e+00> : vector<8xf32>
    %94 = vector.multi_reduction <add>, %93, %cst_33 [1] : vector<8x32xf32> to vector<8xf32>
    %95 = vector.shape_cast %94 : vector<8xf32> to vector<8x1xf32>
    %96 = math.rsqrt %95 : vector<8x1xf32>
    %97 = arith.mulf %92, %5 : vector<8x1xf32>
    %98 = arith.mulf %97, %96 : vector<8x1xf32>
    %cst_34 = arith.constant 14.2857141 : f32
    %99 = vector.broadcast %cst_34 : f32 to vector<8x1xf32>
    %100 = arith.mulf %98, %99 : vector<8x1xf32>
    %c0_35 = arith.constant 0 : index
    %c224 = arith.constant 224 : index
    %101 = vector.load %arg3[%c0_35, %c224] : memref<8x256xf32, #tpu.memory_space<vmem>>, vector<8x32xf32>
    %102 = arith.mulf %0, %101 : vector<8x32xf32>
    %cst_36 = arith.constant dense<0.000000e+00> : vector<8xf32>
    %103 = vector.multi_reduction <add>, %102, %cst_36 [1] : vector<8x32xf32> to vector<8xf32>
    %104 = vector.shape_cast %103 : vector<8xf32> to vector<8x1xf32>
    %105 = arith.mulf %101, %101 : vector<8x32xf32>
    %cst_37 = arith.constant dense<0.000000e+00> : vector<8xf32>
    %106 = vector.multi_reduction <add>, %105, %cst_37 [1] : vector<8x32xf32> to vector<8xf32>
    %107 = vector.shape_cast %106 : vector<8xf32> to vector<8x1xf32>
    %108 = math.rsqrt %107 : vector<8x1xf32>
    %109 = arith.mulf %104, %5 : vector<8x1xf32>
    %110 = arith.mulf %109, %108 : vector<8x1xf32>
    %cst_38 = arith.constant 14.2857141 : f32
    %111 = vector.broadcast %cst_38 : f32 to vector<8x1xf32>
    %112 = arith.mulf %110, %111 : vector<8x1xf32>
    %113 = arith.maximumf %16, %28 : vector<8x1xf32>
    %114 = arith.maximumf %113, %40 : vector<8x1xf32>
    %115 = arith.maximumf %114, %52 : vector<8x1xf32>
    %116 = arith.maximumf %115, %64 : vector<8x1xf32>
    %117 = arith.maximumf %116, %76 : vector<8x1xf32>
    %118 = arith.maximumf %117, %88 : vector<8x1xf32>
    %119 = arith.maximumf %118, %100 : vector<8x1xf32>
    %120 = arith.maximumf %119, %112 : vector<8x1xf32>
    %121 = arith.subf %16, %120 : vector<8x1xf32>
    %122 = math.exp %121 : vector<8x1xf32>
    %123 = arith.subf %28, %120 : vector<8x1xf32>
    %124 = math.exp %123 : vector<8x1xf32>
    %125 = arith.addf %122, %124 : vector<8x1xf32>
    %126 = arith.subf %40, %120 : vector<8x1xf32>
    %127 = math.exp %126 : vector<8x1xf32>
    %128 = arith.addf %125, %127 : vector<8x1xf32>
    %129 = arith.subf %52, %120 : vector<8x1xf32>
    %130 = math.exp %129 : vector<8x1xf32>
    %131 = arith.addf %128, %130 : vector<8x1xf32>
    %132 = arith.subf %64, %120 : vector<8x1xf32>
    %133 = math.exp %132 : vector<8x1xf32>
    %134 = arith.addf %131, %133 : vector<8x1xf32>
    %135 = arith.subf %76, %120 : vector<8x1xf32>
    %136 = math.exp %135 : vector<8x1xf32>
    %137 = arith.addf %134, %136 : vector<8x1xf32>
    %138 = arith.subf %88, %120 : vector<8x1xf32>
    %139 = math.exp %138 : vector<8x1xf32>
    %140 = arith.addf %137, %139 : vector<8x1xf32>
    %141 = arith.subf %100, %120 : vector<8x1xf32>
    %142 = math.exp %141 : vector<8x1xf32>
    %143 = arith.addf %140, %142 : vector<8x1xf32>
    %144 = arith.subf %112, %120 : vector<8x1xf32>
    %145 = math.exp %144 : vector<8x1xf32>
    %146 = arith.addf %143, %145 : vector<8x1xf32>
    %147 = math.log %146 : vector<8x1xf32>
    %148 = arith.addf %120, %147 : vector<8x1xf32>
    %149 = arith.subf %148, %16 : vector<8x1xf32>
    %150 = vector.shape_cast %149 : vector<8x1xf32> to vector<1x8x1xf32>
    %cst_39 = arith.constant dense<0.000000e+00> : vector<1xf32>
    %151 = vector.multi_reduction <add>, %150, %cst_39 [1, 2] : vector<1x8x1xf32> to vector<1xf32>
    %152 = vector.shape_cast %151 : vector<1xf32> to vector<1x1x1xf32>
    %153 = vector.extract %152[0, 0, 0] : f32 from vector<1x1x1xf32>
    %cst_40 = arith.constant 0.000000e+00 : f32
    %154 = vector.broadcast %cst_40 : f32 to vector<1x8x128xf32>
    %155 = vector.broadcast %153 : f32 to vector<1x8x128xf32>
    %156 = arith.addf %155, %154 : vector<1x8x128xf32>
    %c0_41 = arith.constant 0 : index
    %c0_42 = arith.constant 0 : index
    %c0_43 = arith.constant 0 : index
    %157 = vector.load %arg4[%c0_41, %c0_42, %c0_43] : memref<1x8x128xf32, #tpu.memory_space<vmem>>, vector<1x8x128xf32>
    tpu.vector_store %arg4[%c0_41, %c0_42, %c0_43], %156 {strides = array<i32>} : memref<1x8x128xf32, #tpu.memory_space<vmem>>, vector<1x8x128xf32>,
    return
  }
  func.func @transform_0(%arg0: i32) -> (i32, i32) {
    %c0_i32 = arith.constant 0 : i32
    %c0_i32_0 = arith.constant 0 : i32
    return %arg0, %c0_i32 : i32, i32
  }
  func.func @transform_1(%arg0: i32) -> (i32, i32) {
    %c0_i32 = arith.constant 0 : i32
    %c0_i32_0 = arith.constant 0 : i32
    return %arg0, %c0_i32 : i32, i32
  }
  func.func @transform_2(%arg0: i32) -> (i32, i32) {
    %c0_i32 = arith.constant 0 : i32
    %c0_i32_0 = arith.constant 0 : i32
    return %arg0, %c0_i32 : i32, i32
  }
  func.func @transform_3(%arg0: i32) -> (i32, i32, i32) {
    %c0_i32 = arith.constant 0 : i32
    %c0_i32_0 = arith.constant 0 : i32
    %c0_i32_1 = arith.constant 0 : i32
    return %arg0, %c0_i32, %c0_i32_0 : i32, i32, i32
  }
}

</mosaic_0001>

<bundles_post_ra>
// kernel: tpu_custom_call.1
= control target key start
LH: loop header
LB: loop body
LE: loop exit
PB: predicated region body
PF: predicated region fallthrough
CT: control target
= control target key end

     0   :  { %8 = vsyncpa [#allocation3], 0  ;;  %s521_s0 = inlined_call_operand.hbm [shape: f32[8,32], index: 0, kind: input, shape index: {}]   ;;  %s522_s1 = inlined_call_operand.hbm [shape: f32[8,32], index: 1, kind: input, shape index: {}]   ;;  %s523_s2 = inlined_call_operand.hbm [shape: f32[8,256], index: 2, kind: input, shape index: {}]   ;;  %s524_s3 = inlined_call_operand.hbm [shape: f32[1,8,128], index: 3, kind: output, shape index: {}]  }
   0x1   :  { %9 = vsyncpa [#allocation6], 0 }
   0x2   :  { %10 = vsyncpa [#allocation4], 0  ;;  %s422_s12 = smov [#allocation5]   ;;  %s423_s14 = smov [#allocation2]  }
   0x3   :  { %s27_s13 = sshll.u32 %s422_s12, 4  ;;  %s17_s15 = sshll.u32 %s423_s14, 4  ;;  %s28_s13 = int_to_ptr.vmem [resolvable:$true] %s27_s13  ;;  %s18_s15 = int_to_ptr.vmem [resolvable:$true] %s17_s15 }
   0x4   :  { %s328_s18 = scalar_lea.hbm %s522_s1, 128 }
   0x5   :  { %p329_p0 = scmp.ne.s32.totalorder %s522_s1, %s328_s18  ;;  %p332_p1 = scmp.lt.u32.totalorder %s328_s18, %s522_s1 }
   0x7   :  { %p334_p2 = pnand %p332_p1, %p329_p0 }
   0x9   :  { %337 = shalt.err (!%p334_p2)
}
   0xa   :  { %s338_s23 = scalar_lea.vmem %s28_s13, 128  ;;  %p343_p4 = scmp.lt.s32.totalorder %s28_s13, %s28_s13 }
   0xb   :  { %p339_p3 = scmp.ne.s32.totalorder %s28_s13, %s338_s23  ;;  %p344_p5 = scmp.lt.s32.totalorder %s338_s23, %s338_s23 }
   0xd   :  { %p345_p6 = por %p344_p5, %p343_p4 }
   0xf   :  { %p346_p7 = pnand %p345_p6, %p339_p3 }
  0x11   :  { %349 = shalt.err (!%p346_p7)
}
  0x12   :  { %30 = dma.hbm_to_vmem [thread:$0]  %s522_s1, 128, %s28_s13, [#allocation6]  }
  0x13   :  { %s350_s28 = scalar_lea.hbm %s521_s0, 128 }
  0x14   :  { %p351_p8 = scmp.ne.s32.totalorder %s521_s0, %s350_s28  ;;  %p354_p9 = scmp.lt.u32.totalorder %s350_s28, %s521_s0 }
  0x16   :  { %p356_p10 = pnand %p354_p9, %p351_p8 }
  0x18   :  { %359 = shalt.err (!%p356_p10)
}
  0x19   :  { %s360_s6 = scalar_lea.vmem %s18_s15, 128  ;;  %p365_p12 = scmp.lt.s32.totalorder %s18_s15, %s18_s15 }
  0x1a   :  { %p361_p11 = scmp.ne.s32.totalorder %s18_s15, %s360_s6  ;;  %p366_p13 = scmp.lt.s32.totalorder %s360_s6, %s360_s6 }
  0x1c   :  { %p367_p0 = por %p366_p13, %p365_p12 }
  0x1e   :  { %p368_p1 = pnand %p367_p0, %p361_p11 }
  0x20   :  { %371 = shalt.err (!%p368_p1)
}
  0x21   :  { %20 = dma.hbm_to_vmem [thread:$0]  %s521_s0, 128, %s18_s15, [#allocation3]  }
  0x22   :  { %s424_s8 = smov [#allocation7]   ;;  %s372_s12 = scalar_lea.hbm %s523_s2, 256 }
  0x23   :  { %s37_s9 = sshll.u32 %s424_s8, 4  ;;  %p373_p2 = scmp.ne.s32.totalorder %s523_s2, %s372_s12  ;;  %s38_s9 = int_to_ptr.vmem [resolvable:$true] %s37_s9 }
  0x24   :  { %p376_p3 = scmp.lt.u32.totalorder %s372_s12, %s523_s2 }
  0x26   :  { %p378_p4 = pnand %p376_p3, %p373_p2 }
  0x28   :  { %381 = shalt.err (!%p378_p4)
}
  0x29   :  { %s382_s18 = scalar_lea.vmem %s38_s9, 256  ;;  %p387_p6 = scmp.lt.s32.totalorder %s38_s9, %s38_s9 }
  0x2a   :  { %p383_p5 = scmp.ne.s32.totalorder %s38_s9, %s382_s18  ;;  %p388_p7 = scmp.lt.s32.totalorder %s382_s18, %s382_s18 }
  0x2c   :  { %p389_p8 = por %p388_p7, %p387_p6 }
  0x2e   :  { %p390_p9 = pnand %p389_p8, %p383_p5 }
  0x30   :  { %393 = shalt.err (!%p390_p9)
}
  0x31   :  { %40 = dma.hbm_to_vmem [thread:$0]  %s523_s2, 256, %s38_s9, [#allocation6]  }
  0x32   :  { %416 = dma.done.wait [#allocation3], 128  }
  0x33   :  { %417 = vsyncadd [#allocation3], 4294967168 }
  0x34   :  { %418 = dma.done.wait [#allocation6], 384  }
  0x35   :  { %419 = vsyncadd [#allocation6], 4294966912  ;;  %v70_v0 = vld [vmem:[#allocation7] sm:$0xff]  ;;  %s425_s19 = smov 96   ;;  %v136_v2 = vld [vmem:[#allocation7 + $0x8] sm:$0xff]  ;;  %s426_s20 = smov 32  }
  0x36   :  { %84 = vrot.lane.b32.xlu1 %v70_v0, %s425_s19  ;;  %v75_v1 = vmul.f32 %v70_v0, %v70_v0  ;;  %s427_s21 = smov 64   ;;  %v141_v3 = vmul.f32 %v136_v2, %v136_v2  ;;  %v50_v4 = vld [vmem:[#allocation2] sm:$0xff]  ;;  %v51_v5 = vld [vmem:[#allocation5] sm:$0xff]  ;;  %vm53_vm0 = vcmask 261120   ;;  %vm249_vm1 = vcmask 7168   ;;  %s428_s2 = smov [#allocation8]  }
  0x37   :  { %v52_v6 = vmul.f32 %v50_v4, %v50_v4  ;;  %v58_v7 = vmul.f32 %v51_v5, %v51_v5  ;;  %v63_v9 = vmul.f32 %v51_v5, %v50_v4  ;;  %v71_v12 = vmul.f32 %v70_v0, %v50_v4  ;;  %s269_s22 = sshll.u32 %s428_s2, 4  ;;  %s270_s22 = int_to_ptr.vmem [resolvable:$true] %s269_s22 }
  0x38   :  { %92 = vrot.lane.b32.xlu0 %v75_v1, %s425_s19  ;;  %v76_v13 = vsel %vm53_vm0, %v75_v1, 0.0  ;;  %v142_v15 = vsel %vm53_vm0, %v141_v3, 0.0  ;;  %v137_v36 = vmul.f32 %v136_v2, %v50_v4  ;;  %s394_s24 = scalar_lea.vmem %s270_s22, 128  ;;  %p399_p11 = scmp.lt.s32.totalorder %s270_s22, %s270_s22 }
  0x39   :  { %v54_v8 = vsel %vm53_vm0, %v52_v6, 0.0  ;;  %v59_v10 = vsel %vm53_vm0, %v58_v7, 0.0  ;;  %v64_v11 = vsel %vm53_vm0, %v63_v9, 0.0  ;;  %v72_v14 = vsel %vm53_vm0, %v71_v12, 0.0  ;;  %p395_p10 = scmp.ne.s32.totalorder %s270_s22, %s394_s24  ;;  %p400_p12 = scmp.lt.s32.totalorder %s394_s24, %s394_s24 }
  0x3a   :  { %126 = vrot.lane.b32.xlu1 %v75_v1, %s426_s20  ;;  %v138_v43 = vsel %vm53_vm0, %v137_v36, 0.0 }
  0x3b   :  { %p401_p13 = por %p400_p12, %p399_p11 }
  0x3c   :  { %109 = vrot.lane.b32.xlu0 %v75_v1, %s427_s21 }
  0x3d   :  { %p402_p0 = pnand %p401_p13, %p395_p10 }
  0x3e   :  { %102 = vrot.lane.b32.xlu1 %v70_v0, %s427_s21 }
  0x40   :  { %158 = vrot.lane.b32.xlu0 %v141_v3, %s425_s19 }
  0x42   :  { %119 = vrot.lane.b32.xlu1 %v70_v0, %s426_s20 }
  0x44   :  { %175 = vrot.lane.b32.xlu0 %v141_v3, %s427_s21 }
  0x46   :  { %150 = vrot.lane.b32.xlu1 %v136_v2, %s425_s19 }
  0x48   :  { %192 = vrot.lane.b32.xlu0 %v141_v3, %s426_s20 }
  0x4a   :  { %185 = vrot.lane.b32.xlu1 %v136_v2, %s426_s20 }
  0x4c   :  { %168 = vrot.lane.b32.xlu0 %v136_v2, %s427_s21 }
  0x6b   :  { %55 = vadd.xlane.f32.xlu0 %v54_v8 }
  0x6e   :  { %60 = vadd.xlane.f32.xlu1 %v59_v10 }
  0x6f   :  { %65 = vadd.xlane.f32.xlu0 %v64_v11 }
  0x72   :  { %77 = vadd.xlane.f32.xlu1 %v76_v13 }
  0x73   :  { %73 = vadd.xlane.f32.xlu0 %v72_v14 }
  0x77   :  { %143 = vadd.xlane.f32.xlu0 %v142_v15 }
  0xa8   :  { %v85_v16 = vpop.permute.xlu1 %84 }
  0xa9   :  { %v87_v17 = vmul.f32 %v85_v16, %v50_v4 }
  0xaa   :  { %v93_v18 = vpop.permute.xlu0 %92 }
  0xab   :  { %v95_v19 = vsel %vm53_vm0, %v93_v18, 0.0  ;;  %v88_v20 = vsel %vm53_vm0, %v87_v17, 0.0 }
  0xac   :  { %v127_v21 = vpop.permute.xlu1 %126  ;;  %96 = vadd.xlane.f32.xlu1 %v95_v19  ;;  %89 = vadd.xlane.f32.xlu0 %v88_v20 }
  0xad   :  { %v129_v27 = vsel %vm53_vm0, %v127_v21, 0.0 }
  0xae   :  { %v110_v22 = vpop.permute.xlu0 %109 }
  0xaf   :  { %v112_v23 = vsel %vm53_vm0, %v110_v22, 0.0 }
  0xb0   :  { %v103_v24 = vpop.permute.xlu1 %102  ;;  %113 = vadd.xlane.f32.xlu1 %v112_v23 }
  0xb1   :  { %v105_v25 = vmul.f32 %v103_v24, %v50_v4 }
  0xb2   :  { %v159_v26 = vpop.permute.xlu0 %158 }
  0xb3   :  { %v106_v28 = vsel %vm53_vm0, %v105_v25, 0.0  ;;  %v161_v32 = vsel %vm53_vm0, %v159_v26, 0.0 }
  0xb4   :  { %v120_v29 = vpop.permute.xlu1 %119  ;;  %130 = vadd.xlane.f32.xlu1 %v129_v27  ;;  %107 = vadd.xlane.f32.xlu0 %v106_v28 }
  0xb5   :  { %v122_v30 = vmul.f32 %v120_v29, %v50_v4 }
  0xb6   :  { %v176_v31 = vpop.permute.xlu0 %175 }
  0xb7   :  { %v123_v33 = vsel %vm53_vm0, %v122_v30, 0.0  ;;  %v178_v39 = vsel %vm53_vm0, %v176_v31, 0.0 }
  0xb8   :  { %162 = vadd.xlane.f32.xlu1 %v161_v32  ;;  %124 = vadd.xlane.f32.xlu0 %v123_v33  ;;  %v151_v34 = vpop.permute.xlu1 %150 }
  0xb9   :  { %v153_v35 = vmul.f32 %v151_v34, %v50_v4 }
  0xba   :  { %v193_v37 = vpop.permute.xlu0 %192 }
  0xbb   :  { %v195_v38 = vsel %vm53_vm0, %v193_v37, 0.0  ;;  %v154_v42 = vsel %vm53_vm0, %v153_v35, 0.0 }
  0xbc   :  { %196 = vadd.xlane.f32.xlu1 %v195_v38  ;;  %179 = vadd.xlane.f32.xlu0 %v178_v39  ;;  %v186_v40 = vpop.permute.xlu1 %185 }
  0xbd   :  { %v188_v41 = vmul.f32 %v186_v40, %v50_v4 }
  0xbe   :  { %v169_v44 = vpop.permute.xlu0 %168 }
  0xbf   :  { %v171_v45 = vmul.f32 %v169_v44, %v50_v4  ;;  %v189_v46 = vsel %vm53_vm0, %v188_v41, 0.0 }
  0xc0   :  { %155 = vadd.xlane.f32.xlu1 %v154_v42  ;;  %139 = vadd.xlane.f32.xlu0 %v138_v43 }
  0xc1   :  { %v172_v47 = vsel %vm53_vm0, %v171_v45, 0.0 }
  0xc4   :  { %190 = vadd.xlane.f32.xlu1 %v189_v46  ;;  %173 = vadd.xlane.f32.xlu0 %v172_v47 }
  0xf8   :  { %v56_v48 = vpop.xlane.xlu0 %55 }
  0xf9   :  { %288 = vrsqrt.f32 %v56_v48 }
  0xfb   :  { %v61_v50 = vpop.xlane.xlu1 %60 }
  0xfc   :  { %v66_v49 = vpop.xlane.xlu0 %65  ;;  %290 = vrsqrt.f32 %v61_v50 }
  0xff   :  { %v78_v52 = vpop.xlane.xlu1 %77 }
 0x100   :  { %v74_v51 = vpop.xlane.xlu0 %73  ;;  %292 = vrsqrt.f32 %v78_v52 }
 0x103   :  { %v289_v55 = vpop.eup %288 }
 0x104   :  { %v144_v53 = vpop.xlane.xlu0 %143  ;;  %v67_v59 = vmul.f32 %v289_v55, %v66_v49  ;;  %v80_v60 = vmul.f32 %v289_v55, %v74_v51 }
 0x106   :  { %v291_v58 = vpop.eup %290 }
 0x107   :  { %v68_v0 = vmul.f32 %v291_v58, %v67_v59 }
 0x109   :  { %v504_v7 = vmul.f32 14.285714, %v68_v0 }
 0x10a   :  { %v293_v61 = vpop.eup %292 }
 0x10b   :  { %v81_v1 = vmul.f32 %v293_v61, %v80_v60 }
 0x10d   :  { %v82_v8 = vmul.f32 14.285714, %v81_v1 }
 0x10f   :  { %v202_v15 = vmax.f32 %v504_v7, %v82_v8 }
 0x139   :  { %v97_v54 = vpop.xlane.xlu1 %96  ;;  %v90_v56 = vpop.xlane.xlu0 %89 }
 0x13a   :  { %294 = vrsqrt.f32 %v97_v54  ;;  %v99_v2 = vmul.f32 %v289_v55, %v90_v56 }
 0x13d   :  { %v114_v57 = vpop.xlane.xlu1 %113 }
 0x13e   :  { %296 = vrsqrt.f32 %v114_v57 }
 0x141   :  { %v131_v62 = vpop.xlane.xlu1 %130  ;;  %v108_v63 = vpop.xlane.xlu0 %107 }
 0x142   :  { %298 = vrsqrt.f32 %v131_v62  ;;  %v116_v9 = vmul.f32 %v289_v55, %v108_v63 }
 0x143   :  { %300 = vrsqrt.f32 %v144_v53 }
 0x144   :  { %v295_v3 = vpop.eup %294 }
 0x145   :  { %v100_v4 = vmul.f32 %v295_v3, %v99_v2  ;;  %v163_v5 = vpop.xlane.xlu1 %162  ;;  %v125_v6 = vpop.xlane.xlu0 %124 }
 0x146   :  { %302 = vrsqrt.f32 %v163_v5  ;;  %v133_v17 = vmul.f32 %v289_v55, %v125_v6 }
 0x147   :  { %v101_v11 = vmul.f32 14.285714, %v100_v4 }
 0x148   :  { %v297_v10 = vpop.eup %296 }
 0x149   :  { %v117_v12 = vmul.f32 %v297_v10, %v116_v9  ;;  %v197_v13 = vpop.xlane.xlu1 %196  ;;  %v180_v14 = vpop.xlane.xlu0 %179  ;;  %v203_v19 = vmax.f32 %v202_v15, %v101_v11 }
 0x14a   :  { %304 = vrsqrt.f32 %v197_v13 }
 0x14b   :  { %v118_v16 = vmul.f32 14.285714, %v117_v12  ;;  %306 = vrsqrt.f32 %v180_v14 }
 0x14c   :  { %v299_v18 = vpop.eup %298 }
 0x14d   :  { %v134_v20 = vmul.f32 %v299_v18, %v133_v17  ;;  %v156_v21 = vpop.xlane.xlu1 %155  ;;  %v140_v22 = vpop.xlane.xlu0 %139  ;;  %v204_v26 = vmax.f32 %v203_v19, %v118_v16 }
 0x14e   :  { %v165_v23 = vmul.f32 %v289_v55, %v156_v21  ;;  %v146_v24 = vmul.f32 %v289_v55, %v140_v22  ;;  %v301_v25 = vpop.eup %300 }
 0x14f   :  { %v135_v27 = vmul.f32 14.285714, %v134_v20 }
 0x150   :  { %v303_v28 = vpop.eup %302  ;;  %v147_v29 = vmul.f32 %v301_v25, %v146_v24 }
 0x151   :  { %v205_v30 = vmax.f32 %v204_v26, %v135_v27  ;;  %v166_v31 = vmul.f32 %v303_v28, %v165_v23  ;;  %v191_v32 = vpop.xlane.xlu1 %190  ;;  %v174_v33 = vpop.xlane.xlu0 %173 }
 0x152   :  { %v148_v34 = vmul.f32 14.285714, %v147_v29  ;;  %v199_v35 = vmul.f32 %v289_v55, %v191_v32  ;;  %v182_v36 = vmul.f32 %v289_v55, %v174_v33 }
 0x153   :  { %v167_v37 = vmul.f32 14.285714, %v166_v31 }
 0x154   :  { %v305_v38 = vpop.eup %304  ;;  %v206_v39 = vmax.f32 %v205_v30, %v148_v34 }
 0x155   :  { %v307_v40 = vpop.eup %306  ;;  %v200_v41 = vmul.f32 %v305_v38, %v199_v35 }
 0x156   :  { %v207_v42 = vmax.f32 %v206_v39, %v167_v37  ;;  %v183_v43 = vmul.f32 %v307_v40, %v182_v36 }
 0x157   :  { %v201_v45 = vmul.f32 14.285714, %v200_v41 }
 0x158   :  { %v184_v44 = vmul.f32 14.285714, %v183_v43 }
 0x15a   :  { %v208_v46 = vmax.f32 %v207_v42, %v184_v44 }
 0x15c   :  { %v209_v47 = vmax.f32 %v208_v46, %v201_v45 }
 0x15e   :  { %v210_v48 = vsub.f32 %v504_v7, %v209_v47  ;;  %v213_v49 = vsub.f32 %v82_v8, %v209_v47  ;;  %v217_v50 = vsub.f32 %v101_v11, %v209_v47  ;;  %v221_v53 = vsub.f32 %v118_v16, %v209_v47 }
 0x15f   :  { %v225_v55 = vsub.f32 %v135_v27, %v209_v47  ;;  %v229_v57 = vsub.f32 %v148_v34, %v209_v47  ;;  %v233_v59 = vsub.f32 %v167_v37, %v209_v47  ;;  %v237_v60 = vsub.f32 %v184_v44, %v209_v47 }
 0x160   :  { %v211_v51 = vmul.f32 1.442695, %v210_v48  ;;  %v214_v52 = vmul.f32 1.442695, %v213_v49  ;;  %v218_v54 = vmul.f32 1.442695, %v217_v50  ;;  %v241_v63 = vsub.f32 %v201_v45, %v209_v47 }
 0x161   :  { %v222_v56 = vmul.f32 1.442695, %v221_v53  ;;  %v226_v58 = vmul.f32 1.442695, %v225_v55  ;;  %v230_v61 = vmul.f32 1.442695, %v229_v57 }
 0x162   :  { %308 = vpow2.f32 %v211_v51  ;;  %v234_v62 = vmul.f32 1.442695, %v233_v59  ;;  %v238_v0 = vmul.f32 1.442695, %v237_v60  ;;  %v242_v3 = vmul.f32 1.442695, %v241_v63 }
 0x163   :  { %310 = vpow2.f32 %v214_v52 }
 0x164   :  { %312 = vpow2.f32 %v218_v54 }
 0x165   :  { %314 = vpow2.f32 %v222_v56 }
 0x166   :  { %316 = vpow2.f32 %v226_v58 }
 0x167   :  { %318 = vpow2.f32 %v230_v61 }
 0x168   :  { %320 = vpow2.f32 %v234_v62 }
 0x169   :  { %322 = vpow2.f32 %v238_v0 }
 0x16a   :  { %324 = vpow2.f32 %v242_v3 }
 0x16c   :  { %v309_v1 = vpop.eup %308 }
 0x16d   :  { %v311_v2 = vpop.eup %310 }
 0x16e   :  { %v216_v4 = vadd.f32 %v311_v2, %v309_v1  ;;  %v313_v5 = vpop.eup %312 }
 0x16f   :  { %v315_v8 = vpop.eup %314 }
 0x170   :  { %v220_v6 = vadd.f32 %v313_v5, %v216_v4  ;;  %v317_v10 = vpop.eup %316 }
 0x171   :  { %v319_v12 = vpop.eup %318 }
 0x172   :  { %v224_v9 = vadd.f32 %v315_v8, %v220_v6  ;;  %v321_v14 = vpop.eup %320 }
 0x173   :  { %v323_v16 = vpop.eup %322 }
 0x174   :  { %v228_v11 = vadd.f32 %v317_v10, %v224_v9  ;;  %v325_v18 = vpop.eup %324 }
 0x176   :  { %v232_v13 = vadd.f32 %v319_v12, %v228_v11 }
 0x178   :  { %v236_v15 = vadd.f32 %v321_v14, %v232_v13 }
 0x17a   :  { %v240_v17 = vadd.f32 %v323_v16, %v236_v15 }
 0x17c   :  { %v244_v19 = vadd.f32 %v325_v18, %v240_v17 }
 0x17e   :  { %326 = vlog2.f32 %v244_v19 }
 0x188   :  { %v327_v20 = vpop.eup %326 }
 0x189   :  { %v246_v21 = vmul.f32 0.6931472, %v327_v20 }
 0x18b   :  { %v247_v22 = vadd.f32 %v246_v21, %v209_v47 }
 0x18d   :  { %v248_v23 = vsub.f32 %v247_v22, %v504_v7 }
 0x18f   :  { %v250_v24 = vsel %vm249_vm1, %v248_v23, 0.0 }
 0x190   :  { %251 = vadd.xlane.f32.xlu0 %v250_v24 }
 0x21d   :  { %v252_v25 = vpop.xlane.xlu0 %251 }
 0x21e   :  { %v253_v26 = vrot.slane %v252_v25, 4 }
 0x220   :  { %v254_v27 = vadd.f32 %v253_v26, %v252_v25 }
 0x222   :  { %v255_v28 = vrot.slane %v254_v27, 2 }
 0x224   :  { %v256_v29 = vadd.f32 %v255_v28, %v254_v27 }
 0x226   :  { %v257_v30 = vrot.slane %v256_v29, 1 }
 0x228   :  { %v258_v31 = vadd.f32 %v257_v30, %v256_v29 }
 0x22a   :  { %279 = vpush %v258_v31 }
 0x25b   :  { %s280_s23 = spop %279 }
 0x25c   :  { %v260_v32 = vstv %s280_s23 }
 0x25d   :  { %262 = vst [vmem:[#allocation8] sm:$0xff] %v260_v32 }
 0x25e   :  { %405 = shalt.err (!%p402_p0)
}
 0x25f   :  { %s406_s27 = scalar_lea.hbm %s524_s3, 128 }
 0x260   :  { %p407_p1 = scmp.ne.s32.totalorder %s524_s3, %s406_s27  ;;  %p410_p2 = scmp.lt.u32.totalorder %s406_s27, %s524_s3 }
 0x262   :  { %p412_p3 = pnand %p410_p2, %p407_p1 }
 0x264   :  { %415 = shalt.err (!%p412_p3)
}
 0x265   :  { %272 = dma.vmem_to_hbm [thread:$0]  %s270_s22, 128, %s524_s3, [#allocation4]  }
 0x266   :  { %420 = dma.done.wait [#allocation4], 128  }
 0x267   :  { %421 = vsyncadd [#allocation4], 4294967168 }
 0x268   :  { %276 = vsyncpa [#allocation3], 1 }
 0x269   :  { %277 = vsyncpa [#allocation6], 1 }
 0x26a   :  { %278 = vsyncpa [#allocation4], 1 }

</bundles_post_ra>
